<compile_context>
chip_gen: v7x
topology: tpu7x:2x2x1
jax: 0.10.0
libtpu: 0.0.40
codegen_flags: <defaults>
</compile_context>

<pallas_src>
import math
import functools

import numpy as np
import jax
import jax.numpy as jnp
from jax import lax
from jax.experimental import pallas as pl
from jax.experimental.pallas import tpu as pltpu


# ----------------------------------------------------------------------------
# Host-side constant folding (pure numpy, done once).
# ----------------------------------------------------------------------------
def _bilinear_matrix(in_size, out_size):
    """(out_size, in_size) matrix for 1-D bilinear resize, align_corners=True."""
    if in_size == 1:
        return np.ones((out_size, 1), np.float64)
    src = np.arange(out_size, dtype=np.float64) * (in_size - 1) / (out_size - 1)
    i0 = np.clip(np.floor(src).astype(np.int64), 0, in_size - 2)
    frac = src - i0
    M = np.zeros((out_size, in_size), np.float64)
    M[np.arange(out_size), i0] += 1.0 - frac
    M[np.arange(out_size), i0 + 1] += frac
    return M


def _shifted_interp(Wmat, K, P):
    """A[k] = shift-by-(k-P)-with-zero-pad composed with the interpolation matrix.

    A[k][y, :] = Wmat[y + k - P, :] if 0 <= y + k - P < up_size else 0.
    Shape: (K, up_size, in_size).  Matches a 'same' conv after the upsample.
    """
    up, inp = Wmat.shape
    A = np.zeros((K, up, inp), np.float64)
    for k in range(K):
        lo = max(0, P - k)
        hi = min(up, up + P - k)
        if hi > lo:
            A[k, lo:hi, :] = Wmat[lo + k - P: hi + k - P, :]
    return A


def _default_row_splits():
    """2-way parallel row split on v7x (2 TensorCores); single step on v5e/v6e."""
    try:
        kind = jax.devices()[0].device_kind.lower()
    except Exception:
        return 1
    return 2 if ("v7" in kind or "7x" in kind) else 1


# ----------------------------------------------------------------------------
# Fused kernel: bilinear 2x upsample + 3x3 'same' conv + bias, all batches at once.
# ----------------------------------------------------------------------------
def _deconv_kernel(xT_ref, bn_ref, wf_ref, o_ref, *, KW, NW2, PAD_ROWS):
    xT = xT_ref[...]                                   # (C*H, N*W) bf16

    # W-direction upsample + the KW shifted/zero-padded taps.  The batch index n is
    # carried along lanes via the block-diagonal constant bn, so the final store tile
    # is N*W2 lanes wide.  Three small dots, concatenated along sublanes.
    chunks = [jnp.dot(xT, bn_ref[kw], preferred_element_type=jnp.float32)
              for kw in range(KW)]                     # each (C*H, N*W2) f32
    chunks.append(jnp.ones((PAD_ROWS, NW2), jnp.float32))   # bias/ones rows
    rhs = jnp.concatenate(chunks, axis=0).astype(jnp.bfloat16)  # (KW*C*H+PAD, N*W2)

    # Single fused MXU dot: H-upsample, kh taps, input-channel contraction and bias are
    # all folded into the host-precomputed wf (rows = (Cout, H2), cols = (kw, c, i) + bias).
    acc = jnp.dot(wf_ref[...], rhs, preferred_element_type=jnp.float32)
    o_ref[...] = acc.astype(o_ref.dtype)               # (rows, N*W2), contiguous store


def deconv_forward(x, weight, bias, padding, row_splits=None):
    """x: (N, C, H, W) f32; weight: (Cout, C, KH, KW); bias: (Cout,)."""
    N, C, H, W = x.shape
    Cout, Cin, KH, KW = weight.shape
    assert Cin == C
    # 'same' conv after 2x upsample (kernel_size=3, padding=1 in the module).
    assert KH == 2 * padding + 1 and KW == 2 * padding + 1
    H2, W2 = 2 * H, 2 * W
    CH, NW, NW2 = C * H, N * W, N * W2
    K = KW * CH
    PAD_ROWS = 16                         # bias/ones rows, keeps K sublane-aligned
    Kp = K + PAD_ROWS

    # ---- constants (exact in f64, cast once to bf16) -------------------------------
    Wh = _bilinear_matrix(H, H2)                       # (H2, H)
    Ww = _bilinear_matrix(W, W2)                       # (W2, W)
    Ah = _shifted_interp(Wh, KH, padding)              # (KH, H2, H)  kh taps
    Bw = _shifted_interp(Ww, KW, padding)              # (KW, W2, W)  kw taps

    # bn[kw] = I_N (x) Bw[kw]^T : rows (n, j) -> cols (n, w2); block-diagonal over n so
    # the batch rides along lanes of the stage-1 matmul output.
    bn = np.stack([np.kron(np.eye(N), Bw[k].T) for k in range(KW)], axis=0)
    bn = jnp.asarray(bn, jnp.bfloat16)                 # (KW, N*W, N*W2)

    # wf[(o,y), (kw,c,i)] = sum_kh weight[o,c,kh,kw] * Ah[kh][y,i]; bias in column K.
    wf = np.einsum('kyi,ockw->oywci', Ah, np.asarray(weight, np.float64))
    wf = wf.reshape(Cout * H2, K)
    wf_aug = np.zeros((Cout * H2, Kp), np.float64)
    wf_aug[:, :K] = wf
    wf_aug[:, K] = np.repeat(np.asarray(bias, np.float64), H2)
    wf_aug = jnp.asarray(wf_aug, jnp.bfloat16)         # (Cout*H2, Kp)

    # Input layout plumbing (tiny): (N,C,H,W) -> (C,H,N,W) -> (C*H, N*W), bf16.
    xT = jnp.transpose(x, (1, 2, 0, 3)).reshape(CH, NW).astype(jnp.bfloat16)

    if row_splits is None:
        row_splits = _default_row_splits()
    Mrows = Cout * H2
    if Mrows % row_splits != 0 or (Mrows // row_splits) % 8 != 0:
        row_splits = 1
    RB = Mrows // row_splits

    # Right-sized VMEM budget: all blocks (double-buffered) + kernel temporaries, with
    # generous headroom (actual footprint here is ~0.2 MiB).
    block_bytes = (CH * NW * 2 + KW * NW * NW2 * 2 + RB * Kp * 2
                   + RB * NW2 * 4 + Kp * NW2 * 2 + RB * NW2 * 4)
    vmem_limit = int(max(4 * 1024 * 1024, 8 * block_bytes))

    kern = functools.partial(_deconv_kernel, KW=KW, NW2=NW2, PAD_ROWS=PAD_ROWS)
    out2d = pl.pallas_call(
        kern,
        out_shape=jax.ShapeDtypeStruct((Mrows, NW2), jnp.float32),
        grid_spec=pltpu.PrefetchScalarGridSpec(
            num_scalar_prefetch=0,
            grid=(row_splits,),
            in_specs=[
                pl.BlockSpec((CH, NW), lambda r: (0, 0)),           # resident input
                pl.BlockSpec((KW, NW, NW2), lambda r: (0, 0, 0)),   # resident constant
                pl.BlockSpec((RB, Kp), lambda r: (r, 0)),           # weight row slice
            ],
            out_specs=pl.BlockSpec((RB, NW2), lambda r: (r, 0)),
        ),
        compiler_params=pltpu.CompilerParams(
            dimension_semantics=("parallel",),
            vmem_limit_bytes=vmem_limit),
    )(xT, bn, wf_aug)

    # (Cout*H2, N*W2) -> (N, Cout, H2, W2): leading-dim split + tiny wrapper transpose.
    out = out2d.reshape(Cout, H2, N, W2).transpose(2, 0, 1, 3)
    return out.astype(x.dtype)


if __name__ == "__main__":
    # shapes consistent with deconv(input_channel=4, output_channel=4, k=3, pad=1)
    N, Cin, Cout, H, W = 2, 4, 4, 16, 16
    KH = KW = 3
    PAD = 1

    key = jax.random.PRNGKey(0)
    kx, kwt, kb = jax.random.split(key, 3)
    x = jax.random.normal(kx, (N, Cin, H, W), jnp.float32)

    # deterministic Conv2d-style init (uniform in +/- 1/sqrt(fan_in))
    fan_in = Cin * KH * KW
    bound = 1.0 / math.sqrt(fan_in)
    weight = jax.random.uniform(kwt, (Cout, Cin, KH, KW), jnp.float32, -bound, bound)
    bias = jax.random.uniform(kb, (Cout,), jnp.float32, -bound, bound)

    out = deconv_forward(x, weight, bias, PAD)
    out = jax.block_until_ready(out)
    assert out.shape == (N, Cout, 2 * H, 2 * W)

    # pure-JAX reference (same interpolation matrices + lax conv)
    Whj = jnp.asarray(_bilinear_matrix(H, 2 * H), jnp.float32)
    Wwj = jnp.asarray(_bilinear_matrix(W, 2 * W), jnp.float32)
    ref_up = jnp.einsum("ah,nchw,bw->ncab", Whj, x, Wwj)
    ref = lax.conv_general_dilated(
        ref_up, weight, window_strides=(1, 1),
        padding=[(PAD, PAD), (PAD, PAD)],
        dimension_numbers=("NCHW", "OIHW", "NCHW")) + bias[None, :, None, None]

    # bf16 MXU operands -> allow ~3e-2 absolute slack.
    err = float(jnp.max(jnp.abs(out - ref)))
    assert err < 3e-2, f"max abs error {err}"
    print("KERNEL_OK")
</pallas_src>

<mosaic_0001>
module attributes {stable_mosaic.version = 11 : i64} {
  func.func @_deconv_kernel(%arg0: i32, %arg1: memref<64x32xbf16, #tpu.memory_space<vmem>>, %arg2: memref<3x32x64xbf16, #tpu.memory_space<vmem>>, %arg3: memref<128x208xbf16, #tpu.memory_space<vmem>>, %arg4: memref<128x64xf32, #tpu.memory_space<vmem>>) attributes {dimension_semantics = [#tpu.dimension_semantics<parallel>], iteration_bounds = array<i64: 1>, scalar_prefetch = 0 : i64, scratch_operands = 0 : i64, tpu.core_type = #tpu.core_type<tc>, window_params = [{pipeline_mode = #tpu.pipeline_mode<synchronous>, transform_indices = @transform_0, window_bounds = array<i64: 64, 32>}, {pipeline_mode = #tpu.pipeline_mode<synchronous>, transform_indices = @transform_1, window_bounds = array<i64: 3, 32, 64>}, {transform_indices = @transform_2, window_bounds = array<i64: 128, 208>}, {transform_indices = @transform_3, window_bounds = array<i64: 128, 64>}]} {
    %c0 = arith.constant 0 : index
    %c0_0 = arith.constant 0 : index
    %0 = vector.load %arg1[%c0, %c0_0] : memref<64x32xbf16, #tpu.memory_space<vmem>>, vector<64x32xbf16>
    %c0_1 = arith.constant 0 : index
    %c0_2 = arith.constant 0 : index
    %c0_3 = arith.constant 0 : index
    %1 = vector.load %arg2[%c0_1, %c0_2, %c0_3] : memref<3x32x64xbf16, #tpu.memory_space<vmem>>, vector<1x32x64xbf16>
    %2 = vector.shape_cast %1 : vector<1x32x64xbf16> to vector<32x64xbf16>
    %cst = arith.constant dense<0.000000e+00> : vector<64x64xf32>
    %3 = tpu.matmul %0, %2, %cst {dimension_numbers = #tpu.dot_dimension_numbers<[1], [0], [0], [1], [0, 0, 1, 1], [], []>} : vector<64x32xbf16>, vector<32x64xbf16>, vector<64x64xf32> -> vector<64x64xf32>
    %c1 = arith.constant 1 : index
    %c0_4 = arith.constant 0 : index
    %c0_5 = arith.constant 0 : index
    %4 = vector.load %arg2[%c1, %c0_4, %c0_5] : memref<3x32x64xbf16, #tpu.memory_space<vmem>>, vector<1x32x64xbf16>
    %5 = vector.shape_cast %4 : vector<1x32x64xbf16> to vector<32x64xbf16>
    %cst_6 = arith.constant dense<0.000000e+00> : vector<64x64xf32>
    %6 = tpu.matmul %0, %5, %cst_6 {dimension_numbers = #tpu.dot_dimension_numbers<[1], [0], [0], [1], [0, 0, 1, 1], [], []>} : vector<64x32xbf16>, vector<32x64xbf16>, vector<64x64xf32> -> vector<64x64xf32>
    %c2 = arith.constant 2 : index
    %c0_7 = arith.constant 0 : index
    %c0_8 = arith.constant 0 : index
    %7 = vector.load %arg2[%c2, %c0_7, %c0_8] : memref<3x32x64xbf16, #tpu.memory_space<vmem>>, vector<1x32x64xbf16>
    %8 = vector.shape_cast %7 : vector<1x32x64xbf16> to vector<32x64xbf16>
    %cst_9 = arith.constant dense<0.000000e+00> : vector<64x64xf32>
    %9 = tpu.matmul %0, %8, %cst_9 {dimension_numbers = #tpu.dot_dimension_numbers<[1], [0], [0], [1], [0, 0, 1, 1], [], []>} : vector<64x32xbf16>, vector<32x64xbf16>, vector<64x64xf32> -> vector<64x64xf32>
    %cst_10 = arith.constant 1.000000e+00 : f32
    %10 = vector.broadcast %cst_10 : f32 to vector<16x64xf32>
    %11 = tpu.concatenate %3, %6, %9, %10 in 0 : vector<64x64xf32>, vector<64x64xf32>, vector<64x64xf32>, vector<16x64xf32> -> vector<208x64xf32>
    %12 = arith.truncf %11 : vector<208x64xf32> to vector<208x64xbf16>
    %c0_11 = arith.constant 0 : index
    %c0_12 = arith.constant 0 : index
    %13 = vector.load %arg3[%c0_11, %c0_12] : memref<128x208xbf16, #tpu.memory_space<vmem>>, vector<128x208xbf16>
    %cst_13 = arith.constant dense<0.000000e+00> : vector<128x64xf32>
    %14 = tpu.matmul %13, %12, %cst_13 {dimension_numbers = #tpu.dot_dimension_numbers<[1], [0], [0], [1], [0, 0, 1, 1], [], []>} : vector<128x208xbf16>, vector<208x64xbf16>, vector<128x64xf32> -> vector<128x64xf32>
    %c0_14 = arith.constant 0 : index
    %c0_15 = arith.constant 0 : index
    %15 = vector.load %arg4[%c0_14, %c0_15] : memref<128x64xf32, #tpu.memory_space<vmem>>, vector<128x64xf32>
    tpu.vector_store %arg4[%c0_14, %c0_15], %14 {strides = array<i32>} : memref<128x64xf32, #tpu.memory_space<vmem>>, vector<128x64xf32>,
    return
  }
  func.func @transform_0(%arg0: i32) -> (i32, i32) {
    %c0_i32 = arith.constant 0 : i32
    %c0_i32_0 = arith.constant 0 : i32
    %c0_i32_1 = arith.constant 0 : i32
    return %c0_i32, %c0_i32_0 : i32, i32
  }
  func.func @transform_1(%arg0: i32) -> (i32, i32, i32) {
    %c0_i32 = arith.constant 0 : i32
    %c0_i32_0 = arith.constant 0 : i32
    %c0_i32_1 = arith.constant 0 : i32
    %c0_i32_2 = arith.constant 0 : i32
    return %c0_i32, %c0_i32_0, %c0_i32_1 : i32, i32, i32
  }
  func.func @transform_2(%arg0: i32) -> (i32, i32) {
    %c0_i32 = arith.constant 0 : i32
    %c0_i32_0 = arith.constant 0 : i32
    return %arg0, %c0_i32 : i32, i32
  }
  func.func @transform_3(%arg0: i32) -> (i32, i32) {
    %c0_i32 = arith.constant 0 : i32
    %c0_i32_0 = arith.constant 0 : i32
    return %arg0, %c0_i32 : i32, i32
  }
}

</mosaic_0001>

<bundles_post_ra>
// kernel: tpu_custom_call.1
= control target key start
LH: loop header
LB: loop body
LE: loop exit
PB: predicated region body
PF: predicated region fallthrough
CT: control target
= control target key end

     0   :  { %vm59_vm0 = vcmask 261120   ;;  %v715_v10 = vmov 0   ;;  %vm402_vm1 = vcmask 654336   ;;  %v716_v51 = vmov 1.0|1.0   ;;  %s925_s1 = inlined_call_operand.vmem [shape: bf16[3,32,64], index: 1, kind: input, shape index: {}]   ;;  %s926_s0 = inlined_call_operand.vmem [shape: bf16[64,32], index: 0, kind: input, shape index: {}]   ;;  %s927_s2 = inlined_call_operand.vmem [shape: bf16[128,208], index: 2, kind: input, shape index: {}]   ;;  %s928_s3 = inlined_call_operand.vmem [shape: f32[128,64], index: 3, kind: output, shape index: {}]  }
   0x1   :  { %v681_v0 = vld [vmem:[%s925_s1] sm:$0xff]   ;;  %v682_v1 = vld [vmem:[%s925_s1 + $0x8] sm:$0xff]   ;;  %v685_v3 = vld [vmem:[%s925_s1 + $0x10] sm:$0xff]   ;;  %vm524_vm2 = vcmask 523264  }
   0x2   :  { %617 = vmatprep.subr.bf16.mxu0 %v681_v0  ;;  %v683_v2 = vld [vmem:[%s926_s0] sm:$0xff]   ;;  %v684_v4 = vld [vmem:[%s926_s0 + $0x8] sm:$0xff]   ;;  %629 = vmatprep.subr.bf16.mxu1 %v685_v3  ;;  %v686_v5 = vld [vmem:[%s926_s0 + $0x10] sm:$0xff]  }
   0x3   :  { %618 = vmatpush3.bf16.msra.mxu0 %v681_v0  ;;  %621 = vmatprep.mubr.msk.bf16.mxu0 %vm59_vm0, %v683_v2  ;;  %v688_v6 = vld [vmem:[%s925_s1 + $0x18] sm:$0xff]   ;;  %v689_v7 = vld [vmem:[%s925_s1 + $0x20] sm:$0xff]   ;;  %v690_v8 = vld [vmem:[%s925_s1 + $0x28] sm:$0xff]  }
   0x4   :  { %619 = vmatprep.subr.bf16.mxu0 %v682_v1  ;;  %633 = vmatprep.mubr.msk.bf16.mxu1 %vm59_vm0, %v683_v2  ;;  %v687_v9 = vld [vmem:[%s926_s0 + $0x18] sm:$0xff]   ;;  %v699_v12 = vld [vmem:[%s927_s2 + $0x4] ss:$8 sps:$4 sm:$0xff]   ;;  %v697_v50 = vld [vmem:[%s927_s2] ss:$8 sps:$4 sm:$0xff]  }
   0x5   :  { %630 = vmatpush3.bf16.msra.mxu1 %v685_v3  ;;  %v693_v11 = vld [vmem:[%s927_s2 + $0x34] ss:$8 sps:$4 sm:$0xff]   ;;  %v691_v49 = vld [vmem:[%s927_s2 + $0x30] ss:$8 sps:$4 sm:$0xff]   ;;  %v694_v52 = vld [vmem:[%s927_s2 + $0x44] ss:$8 sps:$4 sm:$0xff]  }
   0x6   :  { %631 = vmatprep.subr.bf16.mxu1 %v688_v6  ;;  %v703_v53 = vld [vmem:[%s927_s2 + $0x14] ss:$8 sps:$4 sm:$0xff]   ;;  %v696_v54 = vld [vmem:[%s927_s2 + $0x40] ss:$8 sps:$4 sm:$0xff]   ;;  %v705_v55 = vld [vmem:[%s927_s2 + $0x10] ss:$8 sps:$4 sm:$0xff]  }
   0x7   :  { %620 = vmatpush3.bf16.msra.mxu0 %v682_v1  ;;  %v700_v56 = vld [vmem:[%s927_s2 + $0x54] ss:$8 sps:$4 sm:$0xff]   ;;  %v709_v57 = vld [vmem:[%s927_s2 + $0x24] ss:$8 sps:$4 sm:$0xff]   ;;  %v702_v58 = vld [vmem:[%s927_s2 + $0x50] ss:$8 sps:$4 sm:$0xff]  }
   0x8   :  { %641 = vmatprep.subr.bf16.mxu0 %v689_v7  ;;  %v711_v59 = vld [vmem:[%s927_s2 + $0x20] ss:$8 sps:$4 sm:$0xff]   ;;  %v706_v60 = vld [vmem:[%s927_s2 + $0x64] ss:$8 sps:$4 sm:$0xff]   ;;  %v712_v62 = vld [vmem:[%s927_s2 + $0x74] ss:$8 sps:$4 sm:$0xff]  }
   0x9   :  { %632 = vmatpush3.bf16.msra.mxu1 %v688_v6  ;;  %v708_v61 = vld [vmem:[%s927_s2 + $0x60] ss:$8 sps:$4 sm:$0xff]   ;;  %v714_v63 = vld [vmem:[%s927_s2 + $0x70] ss:$8 sps:$4 sm:$0xff]  }
   0xa   :  { %622 = vmatmul.mubr.msk.bf16.vlgmr.msra.gmra.mrb[0].mxu0 %vm59_vm0, %v684_v4  ;;  %653 = vmatprep.subr.bf16.mxu1 %v715_v10 }
   0xb   :  { %625 = vmatprep.mubr.msk.bf16.mxu0 %vm59_vm0, %v686_v5  ;;  %642 = vmatpush3.bf16.msra.mxu0 %v689_v7 }
   0xc   :  { %643 = vmatprep.subr.bf16.mxu0 %v690_v8  ;;  %634 = vmatmul.mubr.msk.bf16.vlgmr.msra.gmra.mrb[0].mxu1 %vm59_vm0, %v684_v4 }
   0xd   :  { %637 = vmatprep.mubr.msk.bf16.mxu1 %vm59_vm0, %v686_v5 }
   0xf   :  { %644 = vmatpush3.bf16.msra.mxu0 %v690_v8 }
  0x10   :  { %427 = vmatprep.subr.bf16.mxu0 %v715_v10 }
  0x12   :  { %626 = vmatmul.mubr.msk.bf16.gmra.mrb[4].mxu0 %vm59_vm0, %v687_v9 }
  0x13   :  { %645 = vmatprep.mubr.msk.bf16.mxu0 %vm59_vm0, %v683_v2 }
  0x14   :  { %638 = vmatmul.mubr.msk.bf16.gmra.mrb[4].mxu1 %vm59_vm0, %v687_v9 }
  0x15   :  { %594 = vmatprep.mubr.msk.bf16.mxu1 %vm402_vm1, %v693_v11 }
  0x1a   :  { %646 = vmatmul.mubr.msk.bf16.vlgmr.msra.gmra.mrb[8].mxu0 %vm59_vm0, %v684_v4 }
  0x1b   :  { %649 = vmatprep.mubr.msk.bf16.mxu0 %vm59_vm0, %v686_v5 }
  0x22   :  { %650 = vmatmul.mubr.msk.bf16.gmra.mrb[12].mxu0 %vm59_vm0, %v687_v9 }
  0x23   :  { %591 = vmatprep.mubr.msk.bf16.mxu0 %vm402_vm1, %v699_v12 }
  0xdd   :  { %v623_v13 = vpop.f32.mrb[0].mxu0 }
  0xde   :  { %v106_v14 = vpop.f32.mrb[1].mxu0 }
  0xdf   :  { %v624_v15 = vpop.f32.mrb[2].mxu0  ;;  %v635_v19 = vpop.f32.mrb[0].mxu1 }
  0xe0   :  { %v302_v16 = vpack.c.bf16 %v624_v15, %v623_v13  ;;  %v109_v17 = vpop.f32.mrb[3].mxu0  ;;  %v188_v20 = vpop.f32.mrb[1].mxu1 }
  0xe1   :  { %v301_v18 = vpack.c.bf16 %v109_v17, %v106_v14  ;;  %v636_v21 = vpop.f32.mrb[2].mxu1 }
  0xe2   :  { %v306_v22 = vpack.c.bf16 %v636_v21, %v635_v19  ;;  %v191_v23 = vpop.f32.mrb[3].mxu1 }
  0xe3   :  { %428 = vmatpush1.bf16.msra.mxu0 %v301_v18  ;;  %666 = vmatpush1.bf16.msra.mxu1 %v301_v18  ;;  %v305_v25 = vpack.c.bf16 %v191_v23, %v188_v20 }
  0xe4   :  { %429 = vmatprep.subr.bf16.mxu0 %v715_v10  ;;  %654 = vmatprep.subr.bf16.mxu1 %v715_v10 }
  0xe5   :  { %v627_v24 = vpop.f32.mrb[4].mxu0 }
  0xe6   :  { %v122_v26 = vpop.f32.mrb[5].mxu0 }
  0xe7   :  { %v628_v27 = vpop.f32.mrb[6].mxu0  ;;  %430 = vmatpush1.bf16.msra.mxu0 %v302_v16  ;;  %667 = vmatpush1.bf16.msra.mxu1 %v302_v16  ;;  %v639_v31 = vpop.f32.mrb[4].mxu1 }
  0xe8   :  { %v304_v28 = vpack.c.bf16 %v628_v27, %v627_v24  ;;  %v125_v29 = vpop.f32.mrb[7].mxu0  ;;  %431 = vmatprep.subr.bf16.mxu0 %v715_v10  ;;  %655 = vmatprep.subr.bf16.mxu1 %v715_v10  ;;  %v204_v32 = vpop.f32.mrb[5].mxu1 }
  0xe9   :  { %v303_v30 = vpack.c.bf16 %v125_v29, %v122_v26  ;;  %v640_v33 = vpop.f32.mrb[6].mxu1 }
  0xea   :  { %v308_v34 = vpack.c.bf16 %v640_v33, %v639_v31  ;;  %v207_v35 = vpop.f32.mrb[7].mxu1 }
  0xeb   :  { %432 = vmatpush1.bf16.msra.mxu0 %v303_v30  ;;  %668 = vmatpush1.bf16.msra.mxu1 %v303_v30  ;;  %v307_v36 = vpack.c.bf16 %v207_v35, %v204_v32 }
  0xec   :  { %433 = vmatprep.subr.bf16.mxu0 %v715_v10  ;;  %656 = vmatprep.subr.bf16.mxu1 %v715_v10 }
  0xed   :  { %v647_v37 = vpop.f32.mrb[8].mxu0 }
  0xee   :  { %v270_v38 = vpop.f32.mrb[9].mxu0 }
  0xef   :  { %434 = vmatpush1.bf16.msra.mxu0 %v304_v28  ;;  %669 = vmatpush1.bf16.msra.mxu1 %v304_v28  ;;  %v648_v39 = vpop.f32.mrb[10].mxu0 }
  0xf0   :  { %435 = vmatprep.subr.bf16.mxu0 %v715_v10  ;;  %657 = vmatprep.subr.bf16.mxu1 %v715_v10  ;;  %v310_v40 = vpack.c.bf16 %v648_v39, %v647_v37  ;;  %v273_v41 = vpop.f32.mrb[11].mxu0 }
  0xf1   :  { %v309_v42 = vpack.c.bf16 %v273_v41, %v270_v38 }
  0xf3   :  { %436 = vmatpush1.bf16.msra.mxu0 %v305_v25  ;;  %670 = vmatpush1.bf16.msra.mxu1 %v305_v25 }
  0xf4   :  { %437 = vmatprep.subr.bf16.mxu0 %v715_v10  ;;  %658 = vmatprep.subr.bf16.mxu1 %v715_v10 }
  0xf5   :  { %v651_v43 = vpop.f32.mrb[12].mxu0 }
  0xf6   :  { %v286_v44 = vpop.f32.mrb[13].mxu0 }
  0xf7   :  { %438 = vmatpush1.bf16.msra.mxu0 %v306_v22  ;;  %671 = vmatpush1.bf16.msra.mxu1 %v306_v22  ;;  %v652_v45 = vpop.f32.mrb[14].mxu0 }
  0xf8   :  { %439 = vmatprep.subr.bf16.mxu0 %v715_v10  ;;  %659 = vmatprep.subr.bf16.mxu1 %v715_v10  ;;  %v312_v46 = vpack.c.bf16 %v652_v45, %v651_v43  ;;  %v289_v47 = vpop.f32.mrb[15].mxu0 }
  0xf9   :  { %v311_v48 = vpack.c.bf16 %v289_v47, %v286_v44 }
  0xfb   :  { %440 = vmatpush1.bf16.msra.mxu0 %v307_v36  ;;  %672 = vmatpush1.bf16.msra.mxu1 %v307_v36 }
  0xfc   :  { %441 = vmatprep.subr.bf16.mxu0 %v715_v10  ;;  %660 = vmatprep.subr.bf16.mxu1 %v715_v10 }
  0xff   :  { %442 = vmatpush1.bf16.msra.mxu0 %v308_v34  ;;  %673 = vmatpush1.bf16.msra.mxu1 %v308_v34 }
 0x100   :  { %443 = vmatprep.subr.bf16.mxu0 %v715_v10  ;;  %661 = vmatprep.subr.bf16.mxu1 %v715_v10 }
 0x103   :  { %444 = vmatpush1.bf16.msra.mxu0 %v309_v42  ;;  %674 = vmatpush1.bf16.msra.mxu1 %v309_v42 }
 0x104   :  { %445 = vmatprep.subr.bf16.mxu0 %v715_v10  ;;  %662 = vmatprep.subr.bf16.mxu1 %v715_v10 }
 0x107   :  { %446 = vmatpush1.bf16.msra.mxu0 %v310_v40  ;;  %675 = vmatpush1.bf16.msra.mxu1 %v310_v40 }
 0x108   :  { %447 = vmatprep.subr.bf16.mxu0 %v715_v10  ;;  %663 = vmatprep.subr.bf16.mxu1 %v715_v10 }
 0x10b   :  { %448 = vmatpush1.bf16.msra.mxu0 %v311_v48  ;;  %676 = vmatpush1.bf16.msra.mxu1 %v311_v48 }
 0x10c   :  { %449 = vmatprep.subr.bf16.mxu0 %v715_v10  ;;  %664 = vmatprep.subr.bf16.mxu1 %v715_v10 }
 0x10f   :  { %450 = vmatpush1.bf16.msra.mxu0 %v312_v46  ;;  %677 = vmatpush1.bf16.msra.mxu1 %v312_v46 }
 0x110   :  { %665 = vmatprep.subr.bf16.mxu1 %v715_v10  ;;  %451 = vmatprep.subr.bf16.mxu0 %v715_v10 }
 0x113   :  { %678 = vmatpush1.bf16.msra.mxu1 %v716_v51  ;;  %452 = vmatpush1.bf16.msra.mxu0 %v716_v51 }
 0x116   :  { %484 = vmatmul.mubr.bf16.vlgmr.msra.gmra.mrb[8].mxu1 %v691_v49  ;;  %460 = vmatmul.mubr.bf16.vlgmr.msra.gmra.mrb[16].mxu0 %v697_v50 }
 0x117   :  { %595 = vmatprep.mubr.msk.bf16.mxu1 %vm402_vm1, %v694_v52  ;;  %592 = vmatprep.mubr.msk.bf16.mxu0 %vm402_vm1, %v703_v53 }
 0x11e   :  { %492 = vmatmul.mubr.bf16.gmra.mrb[12].mxu1 %v696_v54  ;;  %468 = vmatmul.mubr.bf16.gmra.mrb[20].mxu0 %v705_v55 }
 0x11f   :  { %596 = vmatprep.mubr.msk.bf16.mxu1 %vm402_vm1, %v700_v56  ;;  %593 = vmatprep.mubr.msk.bf16.mxu0 %vm402_vm1, %v709_v57 }
 0x126   :  { %500 = vmatmul.mubr.bf16.gmra.mrb[16].mxu1 %v702_v58  ;;  %476 = vmatmul.mubr.bf16.gmra.mrb[24].mxu0 %v711_v59 }
 0x127   :  { %597 = vmatprep.mubr.msk.bf16.mxu1 %vm402_vm1, %v706_v60 }
 0x12e   :  { %508 = vmatmul.mubr.bf16.gmra.mrb[20].mxu1 %v708_v61 }
 0x12f   :  { %598 = vmatprep.mubr.msk.bf16.mxu1 %vm402_vm1, %v712_v62 }
 0x136   :  { %516 = vmatmul.mubr.bf16.gmra.mrb[24].mxu1 %v714_v63 }
 0x1e9   :  { %v485_v0 = vpop.f32.mrb[8].mxu1  ;;  %v461_v1 = vpop.f32.mrb[16].mxu0 }
 0x1ea   :  { %531 = vst.msk [vmem:[%s928_s3 + $0x30] sm:$0xff] %vm524_vm2, %v485_v0  ;;  %v487_v2 = vpop.f32.mrb[9].mxu1  ;;  %525 = vst.msk [vmem:[%s928_s3] sm:$0xff] %vm524_vm2, %v461_v1  ;;  %v463_v3 = vpop.f32.mrb[17].mxu0 }
 0x1eb   :  { %v488_v4 = vpop.f32.mrb[10].mxu1  ;;  %v464_v5 = vpop.f32.mrb[18].mxu0 }
 0x1ec   :  { %532 = vst.msk [vmem:[%s928_s3 + $0x38] sm:$0xff] %vm524_vm2, %v488_v4  ;;  %v490_v6 = vpop.f32.mrb[11].mxu1  ;;  %526 = vst.msk [vmem:[%s928_s3 + $0x8] sm:$0xff] %vm524_vm2, %v464_v5  ;;  %v466_v7 = vpop.f32.mrb[19].mxu0 }
 0x1f1   :  { %v493_v8 = vpop.f32.mrb[12].mxu1  ;;  %v469_v9 = vpop.f32.mrb[20].mxu0 }
 0x1f2   :  { %533 = vst.msk [vmem:[%s928_s3 + $0x40] sm:$0xff] %vm524_vm2, %v493_v8  ;;  %v495_v10 = vpop.f32.mrb[13].mxu1  ;;  %527 = vst.msk [vmem:[%s928_s3 + $0x10] sm:$0xff] %vm524_vm2, %v469_v9  ;;  %v471_v11 = vpop.f32.mrb[21].mxu0 }
 0x1f3   :  { %v496_v12 = vpop.f32.mrb[14].mxu1  ;;  %v472_v13 = vpop.f32.mrb[22].mxu0 }
 0x1f4   :  { %534 = vst.msk [vmem:[%s928_s3 + $0x48] sm:$0xff] %vm524_vm2, %v496_v12  ;;  %v498_v14 = vpop.f32.mrb[15].mxu1  ;;  %528 = vst.msk [vmem:[%s928_s3 + $0x18] sm:$0xff] %vm524_vm2, %v472_v13  ;;  %v474_v15 = vpop.f32.mrb[23].mxu0 }
 0x1f9   :  { %v501_v16 = vpop.f32.mrb[16].mxu1  ;;  %v477_v17 = vpop.f32.mrb[24].mxu0 }
 0x1fa   :  { %535 = vst.msk [vmem:[%s928_s3 + $0x50] sm:$0xff] %vm524_vm2, %v501_v16  ;;  %v503_v18 = vpop.f32.mrb[17].mxu1  ;;  %529 = vst.msk [vmem:[%s928_s3 + $0x20] sm:$0xff] %vm524_vm2, %v477_v17  ;;  %v479_v19 = vpop.f32.mrb[25].mxu0 }
 0x1fb   :  { %v504_v20 = vpop.f32.mrb[18].mxu1  ;;  %v480_v21 = vpop.f32.mrb[26].mxu0 }
 0x1fc   :  { %536 = vst.msk [vmem:[%s928_s3 + $0x58] sm:$0xff] %vm524_vm2, %v504_v20  ;;  %v506_v22 = vpop.f32.mrb[19].mxu1  ;;  %530 = vst.msk [vmem:[%s928_s3 + $0x28] sm:$0xff] %vm524_vm2, %v480_v21  ;;  %v482_v23 = vpop.f32.mrb[27].mxu0 }
 0x201   :  { %v509_v24 = vpop.f32.mrb[20].mxu1 }
 0x202   :  { %537 = vst.msk [vmem:[%s928_s3 + $0x60] sm:$0xff] %vm524_vm2, %v509_v24  ;;  %v511_v25 = vpop.f32.mrb[21].mxu1 }
 0x203   :  { %v512_v26 = vpop.f32.mrb[22].mxu1 }
 0x204   :  { %538 = vst.msk [vmem:[%s928_s3 + $0x68] sm:$0xff] %vm524_vm2, %v512_v26  ;;  %v514_v27 = vpop.f32.mrb[23].mxu1 }
 0x209   :  { %v517_v28 = vpop.f32.mrb[24].mxu1 }
 0x20a   :  { %539 = vst.msk [vmem:[%s928_s3 + $0x70] sm:$0xff] %vm524_vm2, %v517_v28  ;;  %v519_v29 = vpop.f32.mrb[25].mxu1 }
 0x20b   :  { %v520_v30 = vpop.f32.mrb[26].mxu1 }
 0x20c   :  { %540 = vst.msk [vmem:[%s928_s3 + $0x78] sm:$0xff] %vm524_vm2, %v520_v30  ;;  %v522_v31 = vpop.f32.mrb[27].mxu1 }

</bundles_post_ra>
